<compile_context>
chip_gen: v6e
topology: v6e:2x2x1
jax: 0.10.0
libtpu: 0.0.40
codegen_flags: <defaults>
</compile_context>

<pallas_src>
import jax
import jax.numpy as jnp
from jax.experimental import pallas as pl
from jax.experimental.pallas import tpu as pltpu  # noqa: F401 (imported for TPU backend parity)


def _conv_sub_relu_kernel(w_ref, p_ref, o_ref):
    # w_ref: (C_out, 9)    flattened conv weights (VMEM)
    # p_ref: (9, H*W)      im2col patch slab, lane-dense (VMEM)
    # o_ref: (C_out, H*W)  lane-dense output (VMEM)
    e1 = jnp.dot(w_ref[...], p_ref[...], preferred_element_type=jnp.float32)
    e2 = e1 - e1                               # identically zero for finite e1
    o_ref[...] = jnp.maximum(e2, 0.0)          # relu(relu(x)) == relu(x) exactly


def conv_sub_relu(x_nchw, weight):
    """x_nchw: (1, 1, H, W) float32; weight: (16, 1, 3, 3) float32.

    Returns (16, H, W) float32, matching relu(relu((conv(x) - conv(x)).squeeze(0)))."""
    assert x_nchw.shape[0] == 1 and x_nchw.shape[1] == 1
    _, _, H, W = x_nchw.shape
    c_out = weight.shape[0]

    # Wrapper glue (XLA): padding=1 + im2col into a lane-dense (9, H*W) slab.
    x2d = x_nchw[0, 0]
    x_pad = jnp.pad(x2d, ((1, 1), (1, 1)))
    patches = jnp.stack(
        [x_pad[ky:ky + H, kx:kx + W].reshape(H * W)
         for ky in range(3) for kx in range(3)],
        axis=0,
    )                                          # (9, H*W), k = ky*3 + kx
    w_flat = weight.reshape(c_out, 9)          # (C_out, 9), same (ky, kx) order

    out_flat = pl.pallas_call(
        _conv_sub_relu_kernel,
        out_shape=jax.ShapeDtypeStruct((c_out, H * W), jnp.float32),
        in_specs=[
            pl.BlockSpec((c_out, 9), lambda: (0, 0)),
            pl.BlockSpec((9, H * W), lambda: (0, 0)),
        ],
        out_specs=pl.BlockSpec((c_out, H * W), lambda: (0, 0)),
    )(w_flat, patches)

    # Reshape back to the PyTorch .squeeze(0) layout (channel-major NCHW minus N).
    return out_flat.reshape(c_out, H, W)


if __name__ == "__main__":
    key = jax.random.PRNGKey(0)
    k_x, k_w = jax.random.split(key)

    H = W = 16
    x = jax.random.normal(k_x, (1, 1, H, W), dtype=jnp.float32)
    # Conv2d(1, 16, 3) weight shape = (16, 1, 3, 3).
    weight = jax.random.normal(k_w, (16, 1, 3, 3), dtype=jnp.float32) * 0.1

    out = jax.jit(conv_sub_relu)(x, weight)
    out = jax.block_until_ready(out)

    # Reference semantics: conv - conv == 0 for finite inputs, relu(relu(.)) == 0.
    assert out.shape == (16, H, W)
    assert out.dtype == jnp.float32
    assert bool(jnp.all(out == 0.0))

    print("KERNEL_OK")
</pallas_src>

<mosaic_0001>
module attributes {stable_mosaic.version = 11 : i64} {
  func.func @_conv_sub_relu_kernel(%arg0: memref<16x9xf32, #tpu.memory_space<vmem>>, %arg1: memref<9x256xf32, #tpu.memory_space<vmem>>, %arg2: memref<16x256xf32, #tpu.memory_space<vmem>>) attributes {dimension_semantics = [], scalar_prefetch = 0 : i64, scratch_operands = 0 : i64, tpu.core_type = #tpu.core_type<tc>} {
    %c0 = arith.constant 0 : index
    %c0_0 = arith.constant 0 : index
    %0 = vector.load %arg0[%c0, %c0_0] : memref<16x9xf32, #tpu.memory_space<vmem>>, vector<16x9xf32>
    %c0_1 = arith.constant 0 : index
    %c0_2 = arith.constant 0 : index
    %1 = vector.load %arg1[%c0_1, %c0_2] : memref<9x256xf32, #tpu.memory_space<vmem>>, vector<9x256xf32>
    %cst = arith.constant dense<0.000000e+00> : vector<16x256xf32>
    %2 = tpu.matmul %0, %1, %cst {dimension_numbers = #tpu.dot_dimension_numbers<[1], [0], [0], [1], [0, 0, 1, 1], [], []>} : vector<16x9xf32>, vector<9x256xf32>, vector<16x256xf32> -> vector<16x256xf32>
    %3 = arith.subf %2, %2 : vector<16x256xf32>
    %cst_3 = arith.constant 0.000000e+00 : f32
    %4 = vector.broadcast %cst_3 : f32 to vector<16x256xf32>
    %5 = arith.maximumf %3, %4 : vector<16x256xf32>
    %c0_4 = arith.constant 0 : index
    %c0_5 = arith.constant 0 : index
    %6 = vector.load %arg2[%c0_4, %c0_5] : memref<16x256xf32, #tpu.memory_space<vmem>>, vector<16x256xf32>
    tpu.vector_store %arg2[%c0_4, %c0_5], %5 {strides = array<i32>} : memref<16x256xf32, #tpu.memory_space<vmem>>, vector<16x256xf32>,
    return
  }
}

</mosaic_0001>

<bundles_post_ra>
// kernel: conv_sub_relu.1
= control target key start
LH: loop header
LB: loop body
LE: loop exit
PB: predicated region body
PF: predicated region fallthrough
CT: control target
= control target key end

     0   :  { %vm24_vm0 = vcmask 1040384   ;;  %v133_v3 = vmov 0.0   ;;  %vm17_vm1 = vcmask 72704   ;;  %s179_s1 = inlined_call_operand.vmem [shape: f32[9,256], index: 1, kind: input, shape index: {}]   ;;  %s180_s0 = inlined_call_operand.vmem [shape: f32[16,9], index: 0, kind: input, shape index: {}]   ;;  %s181_s2 = inlined_call_operand.vmem [shape: f32[16,256], index: 2, kind: output, shape index: {}]  }
   0x1   :  { %v16_v0 = vld [vmem:[%s179_s1 + $0x18] sm:$0x1]  ;;  %v15_v1 = vld [vmem:[%s179_s1 + $0x10] sm:$0x1]  ;;  %v14_v2 = vld [vmem:[%s179_s1 + $0x8] sm:$0xff]  ;;  %95 = vmatprep.mubr.f32.mxu0 %v133_v3  ;;  %101 = vmatprep.mubr.f32.mxu1 %v133_v3 }
   0x2   :  { %124 = vmatprep.subr.msk.mxu0 %vm24_vm0, %v16_v0  ;;  %128 = vmatprep.subr.msk.mxu1 %vm24_vm0, %v16_v0  ;;  %v13_v4 = vld [vmem:[%s179_s1] sm:$0xff]  ;;  %v12_v6 = vld [vmem:[%s180_s0 + $0x8] sm:$0xff] }
   0x3   :  { %125 = vmatpush1.msk.msra.mxu0 %vm24_vm0, %v15_v1  ;;  %130 = vmatpush1.msk.msra.mxu1 %vm24_vm0, %v15_v1  ;;  %v11_v5 = vld [vmem:[%s180_s0] sm:$0xff] }
   0x4   :  { %61 = vmatprep.subr.mxu0 %v14_v2  ;;  %129 = vmatprep.subr.mxu1 %v14_v2 }
   0x5   :  { %62 = vmatpush1.msra.mxu0 %v13_v4  ;;  %131 = vmatpush1.msra.mxu1 %v13_v4 }
   0x6   :  { %126 = vmatmul.mubr.msk.f32.vlgmr.msra.gmra.mxu0 %vm17_vm1, %v11_v5  ;;  %127 = vmatmul.mubr.msk.f32.vlgmr.msra.gmra.mxu1 %vm17_vm1, %v12_v6 }
  0xc6   :  { %v97_v7 = vpop.f32.mrf.mxu0  ;;  %v103_v8 = vpop.f32.mrf.mxu1 }
  0xc7   :  { %v108_v9 = vsub.f32 %v97_v7, %v97_v7  ;;  %v110_v10 = vsub.f32 %v103_v8, %v103_v8 }
  0xc8   :  { %v99_v11 = vpop.f32.mrf.mxu0  ;;  %v105_v12 = vpop.f32.mrf.mxu1 }
  0xc9   :  { %v112_v13 = vmax.f32 %v108_v9, 0.0  ;;  %v114_v14 = vmax.f32 %v110_v10, 0.0  ;;  %v109_v15 = vsub.f32 %v99_v11, %v99_v11  ;;  %v111_v16 = vsub.f32 %v105_v12, %v105_v12 }
  0xcb   :  { %116 = vst [vmem:[%s181_s2] sm:$0xff] %v112_v13  ;;  %118 = vst [vmem:[%s181_s2 + $0x10] sm:$0xff] %v114_v14  ;;  %v113_v17 = vmax.f32 %v109_v15, 0.0  ;;  %v115_v18 = vmax.f32 %v111_v16, 0.0 }
  0xcd   :  { %117 = vst [vmem:[%s181_s2 + $0x8] sm:$0xff] %v113_v17  ;;  %119 = vst [vmem:[%s181_s2 + $0x18] sm:$0xff] %v115_v18 }

</bundles_post_ra>
